<compile_context>
chip_gen: v7x
topology: tpu7x:2x2x1
jax: 0.10.0
libtpu: 0.0.40
codegen_flags: <defaults>
</compile_context>

<pallas_src>
import functools
from enum import Enum

import jax
import jax.numpy as jnp
import numpy as np
from jax import lax
from jax.experimental import pallas as pl
from jax.experimental.pallas import tpu as pltpu


class AutoMachine(Enum):
    Read = 'Read'
    Write = 'Write'


class ControlModelType(Enum):
    ControlNet = 'ControlNet, Lvmin Zhang'
    T2I_Adapter = 'T2I_Adapter, Chong Mou'
    AttentionInjection = 'AttentionInjection, Lvmin Zhang'


# ----------------------------------------------------------------------------
# Per-generation VMEM budgeting / block sizing
# ----------------------------------------------------------------------------

@functools.lru_cache(maxsize=None)
def _budgets():
    """(vmem_limit_bytes, resident_block_budget_bytes) derived per TPU generation."""
    cap = 128 << 20
    try:
        cap = int(pltpu.get_tpu_info().vmem_capacity_bytes)
    except Exception:
        pass
    # 64 MiB on v5e/v6e (128 MiB physical), 32 MiB on v7x (64 MiB physical).
    limit = max(16 << 20, min(cap // 2, 64 << 20))
    # Half again as the resident-block budget -> headroom for compiler scratch.
    return limit, limit // 2


def _cparams(n_axes=1):
    limit, _ = _budgets()
    return pltpu.CompilerParams(dimension_semantics=("parallel",) * n_axes,
                                vmem_limit_bytes=limit)


def _pick_block_rows(total_rows, per_row_bytes, min_steps=2):
    """Largest multiple-of-8 divisor of `total_rows` whose resident bytes (double
    buffered inputs/outputs + f32 temporaries, all folded into per_row_bytes) fit the
    block budget, capped so the parallel 1-D grid keeps >= min_steps steps (v7x has
    2 TensorCores; one extra grid step costs ~nothing on v5e/v6e)."""
    assert total_rows % 8 == 0
    _, budget = _budgets()
    cap = max(8, (int(budget // max(per_row_bytes, 1)) // 8) * 8)
    if total_rows >= 8 * min_steps:
        cap = min(cap, ((total_rows // min_steps) // 8) * 8)
    cap = min(cap, total_rows)
    best = 8
    for r in range(8, cap + 1, 8):
        if total_rows % r == 0:
            best = r
    return best


def _pad_rows(a):
    # TODO(synk): handle the ragged tail in-kernel (cdiv grid + row mask) instead of
    # this wrapper-side pad; it only triggers when N*C (or N*C*xh/g) % 8 != 0.
    R = a.shape[0]
    Rp = -(-R // 8) * 8
    if Rp != R:
        a = jnp.pad(a, ((0, Rp - R),) + ((0, 0),) * (a.ndim - 1))
    return a, Rp


def _scale_per_batch(N, weight, uc_mask):
    """weight * uc_mask as per-batch data (never a compile-time constant)."""
    s = jnp.ones((N,), jnp.float32)
    if uc_mask is not None:
        s = s * jnp.asarray(uc_mask, jnp.float32).reshape(N)
    if weight is not None:
        s = s * jnp.float32(weight)
    return s


def _nearest_lane_matrix(xw, W, fh, g):
    """0/1 bf16 matrix A of shape (g*xw, g*fh*W): with base/out viewed as
    (N*C*xh/g, g*fh*W) and control as (N*C*xh/g, g*xw), `c2d @ A` is the nearest
    resize of the control to (H, W) (PyTorch floor semantics along W; exact row
    replication along H because H % xh == 0).  A is a few KiB, so double buffering
    it is free, and the MXU work is ~xh/g smaller than the old dense expansion."""
    col_src = (np.arange(W) * xw) // W
    a = np.zeros((xw, fh * W), np.float32)
    for p in range(fh):
        a[col_src, p * W + np.arange(W)] = 1.0
    if g > 1:
        a = np.kron(np.eye(g, dtype=np.float32), a)
    return jnp.asarray(a, jnp.bfloat16)           # 0/1 -> exact in bf16


# ----------------------------------------------------------------------------
# Pallas kernels
# ----------------------------------------------------------------------------

def _add_direct_kernel(b_ref, x_ref, s_ref, o_ref):
    """out = base + x * scale.  x is either full-width (same resolution) or a per-row
    column that broadcasts over the lane axis (global-average-pooling add).  Operands
    arrive in their native dtypes; casts happen on the VMEM-resident block.  One full
    unmasked store per block."""
    b = b_ref[...].astype(jnp.float32)
    x = x_ref[...].astype(jnp.float32) * s_ref[...]
    o_ref[...] = (b + x).astype(o_ref.dtype)


def _add_replicate_kernel(b_ref, c_ref, s_ref, a_ref, o_ref):
    """out = base + nearest_resize(control * scale) for H % xh == 0.
    The resize is a single small lane-expansion matmul with the 0/1 bf16 matrix A.
    The scaled control is split hi/lo in bf16 so the MXU issues single-pass bf16
    matmuls while the selected values keep ~f32 fidelity (A is a pure selection)."""
    c = c_ref[...].astype(jnp.float32) * s_ref[...]
    c_hi = c.astype(jnp.bfloat16)
    c_lo = (c - c_hi.astype(jnp.float32)).astype(jnp.bfloat16)
    a = a_ref[...]
    up = (jnp.dot(c_hi, a, preferred_element_type=jnp.float32)
          + jnp.dot(c_lo, a, preferred_element_type=jnp.float32))
    o_ref[...] = (b_ref[...].astype(jnp.float32) + up).astype(o_ref.dtype)


def _row_mean_kernel(x_ref, s_ref, o_ref):
    """torch.mean(c * weight * uc_mask, dim=(2,3), keepdim=True), rows = (n, c)."""
    x = x_ref[...].astype(jnp.float32) * s_ref[...]
    o_ref[...] = jnp.mean(x, axis=-1, keepdims=True).astype(o_ref.dtype)


def _var_mean_kernel(x_ref, mean_ref, var_ref):
    """torch.var_mean(x, dim=(2,3), keepdim=True, correction=0); two-pass f32."""
    x = x_ref[...].astype(jnp.float32)
    m = jnp.mean(x, axis=-1, keepdims=True)
    d = x - m
    mean_ref[...] = m
    var_ref[...] = jnp.mean(d * d, axis=-1, keepdims=True)


def _adain_kernel(style_ref, x_ref, macc_ref, vacc_ref, ucm_ref, o_ref, *, eps):
    """Read branch of hacked_group_norm_forward.  style_cfg comes in as a (1,) SMEM
    scalar (no recompile per style value); variance uses the same two-pass form as
    the Write path; rsqrt goes to the EUP (free slot in this mem-bound kernel)."""
    style = style_ref[0]
    x = x_ref[...].astype(jnp.float32)
    m = jnp.mean(x, axis=-1, keepdims=True)
    d = x - m
    v = jnp.mean(d * d, axis=-1, keepdims=True)
    gain = jnp.sqrt(jnp.maximum(vacc_ref[...].astype(jnp.float32), eps)) * \
        lax.rsqrt(jnp.maximum(v, eps))
    y_uc = d * gain + macc_ref[...].astype(jnp.float32)
    y_c = jnp.where(ucm_ref[...] > 0.0, x, y_uc)
    o_ref[...] = (style * y_c + (1.0 - style) * y_uc).astype(o_ref.dtype)


# ----------------------------------------------------------------------------
# Wrappers
# ----------------------------------------------------------------------------

def aligned_adding(base, x, require_channel_alignment, *, weight=None, uc_mask=None):
    """Port of `aligned_adding` (NCHW) with the ControlNet scaling optionally fused:
         out = base + nearest_resize(zero_channel_align(x) * weight * uc_mask)
    One read of base / x and one write of out; no upsampled or broadcast intermediate
    ever touches HBM on the common paths."""
    if isinstance(x, float):
        if x == 0.0:
            return base
        return base + x                                  # degenerate scalar path

    N, C, H, W = base.shape
    Cx, xh, xw = int(x.shape[1]), int(x.shape[-2]), int(x.shape[-1])
    out_dtype = jnp.result_type(base.dtype, x.dtype)

    if require_channel_alignment and Cx < C:
        # TODO(synk): zero-pad of the (small) control tensor; an in-kernel channel-iota
        # mask would avoid this extra pass but needs per-block channel bookkeeping.
        x = jnp.pad(x, ((0, 0), (0, C - Cx), (0, 0), (0, 0)))
        Cx = C
    assert Cx == C, "aligned_adding: channel mismatch without require_channel_alignment"

    scale_n = _scale_per_batch(N, weight, uc_mask)

    if (xh, xw) == (H, W) or (xh, xw) == (1, 1):
        resize = False
    elif H % xh == 0:
        resize = True
    else:
        # TODO(synk): rare non-integer-row-factor nearest resize; pre-gather in plain
        # JAX (one extra pass over the control-sized tensor) and use the direct add.
        ri = (np.arange(H) * xh) // H
        ci = (np.arange(W) * xw) // W
        x = x[:, :, ri[:, None], ci[None, :]]
        xh, xw, resize = H, W, False

    isz_b = jnp.dtype(base.dtype).itemsize
    isz_x = jnp.dtype(x.dtype).itemsize
    isz_o = jnp.dtype(out_dtype).itemsize

    if not resize:
        L = H * W
        Lx = 1 if (xh, xw) == (1, 1) else L
        R = N * C
        b2 = base.reshape(R, L)
        x2 = x.reshape(R, Lx)
        s2 = jnp.broadcast_to(scale_n[:, None], (N, C)).reshape(R, 1)
        if R % 8 == 0:
            Rp = R
        else:
            b2, Rp = _pad_rows(b2)
            x2, _ = _pad_rows(x2)
            s2, _ = _pad_rows(s2)
        per_row = L * (2 * isz_b + 2 * isz_o + 8) + Lx * (2 * isz_x + 4)
        BR = _pick_block_rows(Rp, per_row)
        out = pl.pallas_call(
            _add_direct_kernel,
            out_shape=jax.ShapeDtypeStruct((Rp, L), out_dtype),
            grid=(Rp // BR,),
            in_specs=[pl.BlockSpec((BR, L), lambda i: (i, 0)),
                      pl.BlockSpec((BR, Lx), lambda i: (i, 0)),
                      pl.BlockSpec((BR, 1), lambda i: (i, 0))],
            out_specs=pl.BlockSpec((BR, L), lambda i: (i, 0)),
            compiler_params=_cparams(),
        )(b2, x2, s2)
        return out[:R].reshape(N, C, H, W)

    # ---- integer-row-factor nearest resize, fused in-kernel ---------------------
    fh = H // xh
    # Group `g` source rows into the lane axis so the output store is lane dense
    # (>= 128 lanes) even when fh*W is small; the expansion matrix grows as
    # kron(I_g, A) and stays a few KiB.
    g = 1
    while g < xh and g * fh * W < 128:
        g += 1
        while xh % g:
            g += 1
    Wo, Wc = g * fh * W, g * xw
    R = (N * C * xh) // g
    A = _nearest_lane_matrix(xw, W, fh, g)

    b2 = base.reshape(R, Wo)                              # free row-major views
    c2 = x.reshape(R, Wc)
    s2 = jnp.broadcast_to(scale_n[:, None], (N, (C * xh) // g)).reshape(R, 1)
    if R % 8 == 0:
        Rp = R
    else:
        b2, Rp = _pad_rows(b2)
        c2, _ = _pad_rows(c2)
        s2, _ = _pad_rows(s2)

    per_row = Wo * (2 * isz_b + 2 * isz_o + 8) + Wc * (2 * isz_x + 8)
    BR = _pick_block_rows(Rp, per_row)

    out = pl.pallas_call(
        _add_replicate_kernel,
        out_shape=jax.ShapeDtypeStruct((Rp, Wo), out_dtype),
        grid=(Rp // BR,),
        in_specs=[pl.BlockSpec((BR, Wo), lambda i: (i, 0)),
                  pl.BlockSpec((BR, Wc), lambda i: (i, 0)),
                  pl.BlockSpec((BR, 1), lambda i: (i, 0)),
                  pl.BlockSpec(A.shape, lambda i: (0, 0))],
        out_specs=pl.BlockSpec((BR, Wo), lambda i: (i, 0)),
        compiler_params=_cparams(),
    )(b2, c2, s2, A)
    return out[:R].reshape(N, C, H, W)


def global_average_pooling(c, *, weight=None, uc_mask=None):
    """torch.mean(c * weight * uc_mask, dim=(2, 3), keepdim=True)."""
    N, C, xh, xw = c.shape
    R, Ls = N * C, xh * xw
    scale_n = _scale_per_batch(N, weight, uc_mask)
    c2, Rp = _pad_rows(c.reshape(R, Ls))
    s2, _ = _pad_rows(jnp.broadcast_to(scale_n[:, None], (N, C)).reshape(R, 1))
    isz = jnp.dtype(c.dtype).itemsize
    BR = _pick_block_rows(Rp, Ls * (2 * isz + 4) + 8)
    out = pl.pallas_call(
        _row_mean_kernel,
        out_shape=jax.ShapeDtypeStruct((Rp, 1), jnp.float32),
        grid=(Rp // BR,),
        in_specs=[pl.BlockSpec((BR, Ls), lambda i: (i, 0)),
                  pl.BlockSpec((BR, 1), lambda i: (i, 0))],
        out_specs=pl.BlockSpec((BR, 1), lambda i: (i, 0)),
        compiler_params=_cparams(),
    )(c2, s2)
    # The (R, 1) pooled output is lane-narrow but negligible next to the full passes.
    return out[:R].reshape(N, C, 1, 1).astype(c.dtype)


def var_mean_spatial(x):
    """torch.var_mean(x, dim=(2,3), keepdim=True, correction=0) -> (var, mean)."""
    N, C, H, W = x.shape
    R, L = N * C, H * W
    x2, Rp = _pad_rows(x.reshape(R, L))
    isz = jnp.dtype(x.dtype).itemsize
    BR = _pick_block_rows(Rp, L * (2 * isz + 8))
    mean, var = pl.pallas_call(
        _var_mean_kernel,
        out_shape=(jax.ShapeDtypeStruct((Rp, 1), jnp.float32),
                   jax.ShapeDtypeStruct((Rp, 1), jnp.float32)),
        grid=(Rp // BR,),
        in_specs=[pl.BlockSpec((BR, L), lambda i: (i, 0))],
        out_specs=(pl.BlockSpec((BR, 1), lambda i: (i, 0)),
                   pl.BlockSpec((BR, 1), lambda i: (i, 0))),
        compiler_params=_cparams(),
    )(x2)
    return (var[:R].reshape(N, C, 1, 1).astype(x.dtype),
            mean[:R].reshape(N, C, 1, 1).astype(x.dtype))


def adain_group_norm_read(x, mean_bank, var_bank, style_cfgs, uc_indices, eps=1e-6):
    """Read branch of hacked_group_norm_forward."""
    N, C, H, W = x.shape
    style_cfg = float(sum(style_cfgs) / float(len(style_cfgs)))
    mean_acc = sum(mean_bank) / float(len(mean_bank))     # (N, C, 1, 1)
    var_acc = sum(var_bank) / float(len(var_bank))        # (N, C, 1, 1)
    use_uc = (len(uc_indices) > 0) and (style_cfg > 1e-5)
    uc_b = jnp.zeros((N,), jnp.float32)
    if use_uc:
        uc_b = uc_b.at[jnp.asarray(uc_indices, jnp.int32)].set(1.0)
    uc_rows = jnp.broadcast_to(uc_b[:, None], (N, C)).reshape(N * C, 1)

    R, L = N * C, H * W
    x2, Rp = _pad_rows(x.reshape(R, L))
    m2, _ = _pad_rows(mean_acc.reshape(R, 1).astype(jnp.float32))
    v2, _ = _pad_rows(var_acc.reshape(R, 1).astype(jnp.float32))
    u2, _ = _pad_rows(uc_rows)
    isz = jnp.dtype(x.dtype).itemsize
    BR = _pick_block_rows(Rp, L * (4 * isz + 12))
    style_arr = jnp.asarray([style_cfg], jnp.float32)     # data, not a compile const

    out = pl.pallas_call(
        functools.partial(_adain_kernel, eps=float(eps)),
        out_shape=jax.ShapeDtypeStruct((Rp, L), x.dtype),
        grid=(Rp // BR,),
        in_specs=[pl.BlockSpec(memory_space=pltpu.MemorySpace.SMEM),
                  pl.BlockSpec((BR, L), lambda i: (i, 0)),
                  pl.BlockSpec((BR, 1), lambda i: (i, 0)),
                  pl.BlockSpec((BR, 1), lambda i: (i, 0)),
                  pl.BlockSpec((BR, 1), lambda i: (i, 0))],
        out_specs=pl.BlockSpec((BR, L), lambda i: (i, 0)),
        compiler_params=_cparams(),
    )(style_arr, x2, m2, v2, u2)
    return out[:R].reshape(N, C, H, W)


# ----------------------------------------------------------------------------
# UnetHook analogue: state machine + banked group-norm forward
# ----------------------------------------------------------------------------

class UnetHookPallas:
    def __init__(self, lowvram=False):
        self.lowvram = lowvram
        self.attention_auto_machine = AutoMachine.Read
        self.attention_auto_machine_weight = 1.0
        self.gn_auto_machine = AutoMachine.Read
        self.gn_auto_machine_weight = 1.0
        self.current_style_fidelity = 0.0
        self.current_uc_indices = []
        # synthetic single hooked group-norm module
        self.gn_weight = 0.0
        self.mean_bank = []
        self.var_bank = []
        self.style_cfgs = []
        # TODO(synk): the full hooked UNet forward (time_embed, input/middle/output
        # blocks), the VAE hint encode and the attention-bank injection depend on
        # external modules (UNetModel, BasicTransformerBlock, sd_ldm) not defined in
        # this file; not reproduced here.

    def hacked_group_norm_forward(self, x):
        eps = 1e-6
        y = None
        if self.gn_auto_machine == AutoMachine.Write:
            if self.gn_auto_machine_weight > self.gn_weight:
                var, mean = var_mean_spatial(x)
                self.mean_bank.append(mean)
                self.var_bank.append(var)
                self.style_cfgs.append(self.current_style_fidelity)
        if self.gn_auto_machine == AutoMachine.Read:
            if len(self.mean_bank) > 0 and len(self.var_bank) > 0:
                y = adain_group_norm_read(x, self.mean_bank, self.var_bank,
                                          self.style_cfgs,
                                          self.current_uc_indices, eps)
            self.mean_bank = []
            self.var_bank = []
            self.style_cfgs = []
        if y is None:
            y = x
        return y.astype(x.dtype)


# ----------------------------------------------------------------------------
# Pure-JAX references for sanity checks
# ----------------------------------------------------------------------------

def _adain_ref(x, mean_acc, var_acc, style_cfg, uc_indices, eps=1e-6):
    m = x.mean(axis=(2, 3), keepdims=True)
    v = ((x - m) ** 2).mean(axis=(2, 3), keepdims=True)
    std = jnp.sqrt(jnp.maximum(v, eps))
    std_acc = jnp.sqrt(jnp.maximum(var_acc, eps))
    y_uc = (x - m) / std * std_acc + mean_acc
    y_c = y_uc
    if len(uc_indices) > 0 and style_cfg > 1e-5:
        mask = jnp.zeros((x.shape[0], 1, 1, 1), x.dtype).at[jnp.asarray(uc_indices)].set(1.0)
        y_c = mask * x + (1.0 - mask) * y_uc
    return style_cfg * y_c + (1.0 - style_cfg) * y_uc


if __name__ == "__main__":
    key = jax.random.PRNGKey(0)
    k1, k2, k3, k4, k5 = jax.random.split(key, 5)

    N, C, H, W = 2, 4, 16, 16
    x = jax.random.normal(k1, (N, C, H, W), jnp.float32)             # UNet hidden state
    control_cn = jax.random.normal(k2, (N, C, 8, 8), jnp.float32)    # ControlNet output
    control_t2i = jax.random.normal(k3, (N, 2, H, W), jnp.float32)   # T2I output, fewer ch
    ref_feat = jax.random.normal(k4, (N, C, H, W), jnp.float32)      # reference features
    control_odd = jax.random.normal(k5, (N, C, 6, 16), jnp.float32)  # non-integer factor

    weight = 0.825
    uc_mask = jnp.array([1.0, 0.0], jnp.float32)       # generate_uc_mask analogue

    # 1) ControlNet add: cfg-injection uc mask + weight + nearest 8x8 -> 16x16, fused.
    h = aligned_adding(x, control_cn, False, weight=weight, uc_mask=uc_mask)
    # 2) global_average_pooling variant: pooled control, broadcast-added.
    pooled = global_average_pooling(control_cn, weight=weight, uc_mask=uc_mask)
    h_gap = aligned_adding(x, pooled, False)
    # 3) T2I adapter add with channel alignment (2 -> 4 channels).
    h = aligned_adding(h, control_t2i, require_channel_alignment=True)
    # 4) float fast path + general (non-integer factor) nearest fallback.
    h = aligned_adding(h, 0.0, False)
    h_odd = aligned_adding(x, control_odd, False)

    # 5) AdaIN path (hacked_group_norm_forward): Write banks from reference features,
    #    then Read / restyle the composed UNet features.
    hook = UnetHookPallas()
    hook.gn_auto_machine = AutoMachine.Write
    hook.current_style_fidelity = 0.5
    _ = hook.hacked_group_norm_forward(ref_feat)
    saved_mean, saved_var = hook.mean_bank[0], hook.var_bank[0]
    hook.gn_auto_machine = AutoMachine.Read
    hook.current_uc_indices = [0]
    y = hook.hacked_group_norm_forward(h)

    jax.block_until_ready((h, h_gap, h_odd, pooled, y))

    # --- sanity checks vs pure-JAX references ---
    m4 = uc_mask[:, None, None, None]
    c_scaled = control_cn * weight * m4
    ri = (np.arange(H) * 8) // H
    ci = (np.arange(W) * 8) // W
    c_up = c_scaled[:, :, ri[:, None], ci[None, :]]
    t2i_pad = jnp.zeros_like(x).at[:, :2].set(control_t2i)
    h_ref = x + c_up + t2i_pad
    pooled_ref = c_scaled.mean(axis=(2, 3), keepdims=True)
    ro = (np.arange(H) * 6) // H
    co = (np.arange(W) * 16) // W
    h_odd_ref = x + control_odd[:, :, ro[:, None], co[None, :]]

    np.testing.assert_allclose(np.asarray(pooled), np.asarray(pooled_ref),
                               rtol=1e-5, atol=1e-5)
    np.testing.assert_allclose(np.asarray(h_gap), np.asarray(x + pooled_ref),
                               rtol=1e-5, atol=1e-5)
    np.testing.assert_allclose(np.asarray(h), np.asarray(h_ref), rtol=1e-4, atol=1e-4)
    np.testing.assert_allclose(np.asarray(h_odd), np.asarray(h_odd_ref),
                               rtol=1e-5, atol=1e-5)

    y_ref = _adain_ref(h_ref, saved_mean, saved_var, 0.5, [0])
    np.testing.assert_allclose(np.asarray(y), np.asarray(y_ref), rtol=1e-3, atol=1e-3)

    print("KERNEL_OK")
</pallas_src>

<mosaic_0001>
module attributes {stable_mosaic.version = 11 : i64} {
  func.func @_add_replicate_kernel(%arg0: i32, %arg1: memref<8x128xf32, #tpu.memory_space<vmem>>, %arg2: memref<8x32xf32, #tpu.memory_space<vmem>>, %arg3: memref<8x1xf32, #tpu.memory_space<vmem>>, %arg4: memref<32x128xbf16, #tpu.memory_space<vmem>>, %arg5: memref<8x128xf32, #tpu.memory_space<vmem>>) attributes {dimension_semantics = [#tpu.dimension_semantics<parallel>], iteration_bounds = array<i64: 2>, scalar_prefetch = 0 : i64, scratch_operands = 0 : i64, tpu.core_type = #tpu.core_type<tc>, window_params = [{transform_indices = @transform_0, window_bounds = array<i64: 8, 128>}, {transform_indices = @transform_1, window_bounds = array<i64: 8, 32>}, {transform_indices = @transform_2, window_bounds = array<i64: 8, 1>}, {pipeline_mode = #tpu.pipeline_mode<synchronous>, transform_indices = @transform_3, window_bounds = array<i64: 32, 128>}, {transform_indices = @transform_4, window_bounds = array<i64: 8, 128>}]} {
    %c0 = arith.constant 0 : index
    %c0_0 = arith.constant 0 : index
    %0 = vector.load %arg2[%c0, %c0_0] : memref<8x32xf32, #tpu.memory_space<vmem>>, vector<8x32xf32>
    %c0_1 = arith.constant 0 : index
    %c0_2 = arith.constant 0 : index
    %1 = vector.load %arg3[%c0_1, %c0_2] : memref<8x1xf32, #tpu.memory_space<vmem>>, vector<8x1xf32>
    %2 = vector.broadcast %1 : vector<8x1xf32> to vector<8x32xf32>
    %3 = arith.mulf %0, %2 : vector<8x32xf32>
    %4 = arith.truncf %3 : vector<8x32xf32> to vector<8x32xbf16>
    %5 = arith.extf %4 : vector<8x32xbf16> to vector<8x32xf32>
    %6 = arith.subf %3, %5 : vector<8x32xf32>
    %7 = arith.truncf %6 : vector<8x32xf32> to vector<8x32xbf16>
    %c0_3 = arith.constant 0 : index
    %c0_4 = arith.constant 0 : index
    %8 = vector.load %arg4[%c0_3, %c0_4] : memref<32x128xbf16, #tpu.memory_space<vmem>>, vector<32x128xbf16>
    %cst = arith.constant dense<0.000000e+00> : vector<8x128xf32>
    %9 = tpu.matmul %4, %8, %cst {dimension_numbers = #tpu.dot_dimension_numbers<[1], [0], [0], [1], [0, 0, 1, 1], [], []>} : vector<8x32xbf16>, vector<32x128xbf16>, vector<8x128xf32> -> vector<8x128xf32>
    %cst_5 = arith.constant dense<0.000000e+00> : vector<8x128xf32>
    %10 = tpu.matmul %7, %8, %cst_5 {dimension_numbers = #tpu.dot_dimension_numbers<[1], [0], [0], [1], [0, 0, 1, 1], [], []>} : vector<8x32xbf16>, vector<32x128xbf16>, vector<8x128xf32> -> vector<8x128xf32>
    %11 = arith.addf %9, %10 : vector<8x128xf32>
    %c0_6 = arith.constant 0 : index
    %c0_7 = arith.constant 0 : index
    %12 = vector.load %arg1[%c0_6, %c0_7] : memref<8x128xf32, #tpu.memory_space<vmem>>, vector<8x128xf32>
    %13 = arith.addf %12, %11 : vector<8x128xf32>
    %c0_8 = arith.constant 0 : index
    %c0_9 = arith.constant 0 : index
    %14 = vector.load %arg5[%c0_8, %c0_9] : memref<8x128xf32, #tpu.memory_space<vmem>>, vector<8x128xf32>
    tpu.vector_store %arg5[%c0_8, %c0_9], %13 {strides = array<i32>} : memref<8x128xf32, #tpu.memory_space<vmem>>, vector<8x128xf32>,
    return
  }
  func.func @transform_0(%arg0: i32) -> (i32, i32) {
    %c0_i32 = arith.constant 0 : i32
    %c0_i32_0 = arith.constant 0 : i32
    return %arg0, %c0_i32 : i32, i32
  }
  func.func @transform_1(%arg0: i32) -> (i32, i32) {
    %c0_i32 = arith.constant 0 : i32
    %c0_i32_0 = arith.constant 0 : i32
    return %arg0, %c0_i32 : i32, i32
  }
  func.func @transform_2(%arg0: i32) -> (i32, i32) {
    %c0_i32 = arith.constant 0 : i32
    %c0_i32_0 = arith.constant 0 : i32
    return %arg0, %c0_i32 : i32, i32
  }
  func.func @transform_3(%arg0: i32) -> (i32, i32) {
    %c0_i32 = arith.constant 0 : i32
    %c0_i32_0 = arith.constant 0 : i32
    %c0_i32_1 = arith.constant 0 : i32
    return %c0_i32, %c0_i32_0 : i32, i32
  }
  func.func @transform_4(%arg0: i32) -> (i32, i32) {
    %c0_i32 = arith.constant 0 : i32
    %c0_i32_0 = arith.constant 0 : i32
    return %arg0, %c0_i32 : i32, i32
  }
}

</mosaic_0001>

<bundles_post_ra>
// kernel: tpu_custom_call.1
= control target key start
LH: loop header
LB: loop body
LE: loop exit
PB: predicated region body
PF: predicated region fallthrough
CT: control target
= control target key end

     0   :  { %s1189_s0 = inlined_call_operand.hbm [shape: f32[16,128], index: 0, kind: input, shape index: {}]   ;;  %s1190_s1 = inlined_call_operand.hbm [shape: f32[16,32], index: 1, kind: input, shape index: {}]   ;;  %s1191_s2 = inlined_call_operand.hbm [shape: f32[16,1], index: 2, kind: input, shape index: {}]   ;;  %s1192_s3 = inlined_call_operand.hbm [shape: bf16[32,128], index: 3, kind: input, shape index: {}]   ;;  %s1193_s4 = inlined_call_operand.hbm [shape: f32[16,128], index: 4, kind: output, shape index: {}]  }
   0x1   :  { %1209 = sst [smem:[#allocation20_spill]] %s1190_s1 }
   0x2   :  { %9 = vsyncpa [#allocation3], 0 }
   0x3   :  { %11 = vsyncpa [#allocation3 + $0x1], 0 }
   0x4   :  { %12 = vsyncpa [#allocation6], 0 }
   0x5   :  { %14 = vsyncpa [#allocation6 + $0x1], 0 }
   0x6   :  { %15 = vsyncpa [#allocation9], 0 }
   0x7   :  { %16 = vsyncpa [#allocation4], 0 }
   0x8   :  { %18 = vsyncpa [#allocation4 + $0x1], 0  ;;  %s905_s15 = smov 0   ;;  %s907_s16 = smov 0  }
   0x9   :  { %s909_s17 = smov 0   ;;  %s911_s18 = smov 0  }
   0xa LB: > { %1210 = sst [smem:[#allocation15_spill]] %s856_s15  ;;  %s926_s19 = sadd.s32 1, %s868_s18   ;;  %s868_s18 = sphi %s911_s18, %s1238_s18   ;;  %s864_s17 = sphi %s909_s17, %s1242_s17   ;;  %s860_s16 = sphi %s907_s16, %s1241_s16   ;;  %s856_s15 = sphi %s905_s15, %s1240_s15  }
   0xb   : > { %1211 = sst [smem:[#allocation16_spill]] %s868_s18  ;;  %s31_s20 = sadd.s32 1, %s864_s17 }
   0xc   : > { %1212 = sst [smem:[#allocation17_spill]] %s926_s19  ;;  %s28_s21 = ssub.s32 %s868_s18, %s926_s19 }
   0xd   : > { %p1194_p0 = scmp.ne.s32.totalorder %s864_s17, %s860_s16  ;;  %p29_p1 = scmp.eq.s32.totalorder %s28_s21, 0 }
   0xe   : > { %p39_p2 = scmp.eq.s32.totalorder %s868_s18, 0  ;;  %p632_p4 = scmp.lt.s32.totalorder %s868_s18, 2 }
   0xf   : > { %s937_s22 = scalar_select %p29_p1, %s864_s17, %s31_s20  }
  0x10   : > { %p40_p5 = por %p39_p2, %p1194_p0  ;;  %s1195_s23 = sand.u32 1, %s864_s17  }
  0x11   : > { %1213 = sst [smem:[#allocation18_spill]] %s937_s22  ;;  %s945_s24 = sshll.u32 %s1195_s23, 3 }
  0x12   : > { %s948_s25 = sshll.u32 %s868_s18, 7  ;;  %p950_p6 = pnand %p632_p4, %p40_p5 }
  0x13   : > { %s198_s27 = sand.u32 1, %s868_s18   ;;  %s1215_s1 = sld [smem:[#allocation20_spill]] }
  0x14   : > { %s1214_s26 = scalar_select %p950_p6, 1, 0 }
  0x15   : > { %s202_s5 = scalar_lea.vmem [#allocation5], %s945_s24  ;;  %s964_s7 = scalar_lea.sflag [#allocation6], %s198_s27 }
  0x16   : > { %s209_s6 = sshll.u32 %s202_s5, 4  ;;  %p970_p8 = pneg %p950_p6  ;;  %s962_s6 = int_to_ptr.vmem [resolvable:$true] %s209_s6 }
  0x18   : > { %s1216_s9 = scalar_select %p970_p8, 1, 0 }
  0x19   : > { %s959_s30 = scalar_lea.hbm %s1215_s1, %s948_s25  ;;  %s681_s12 = scalar_lea.hbm %s1215_s1, 256 }
  0x1a   : > { %s676_s8 = scalar_lea.hbm %s959_s30, 128  ;;  %p682_p11 = scmp.lt.u32.totalorder %s959_s30, %s1215_s1 }
  0x1b   : > { %p677_p7 = scmp.ne.s32.totalorder %s959_s30, %s676_s8  ;;  %p683_p12 = scmp.lt.u32.totalorder %s681_s12, %s676_s8 }
  0x1c   : > { %p685_p1 = scmp.lt.u32.totalorder %s676_s8, %s959_s30 }
  0x1d   : > { %p679_p9 = pnand %p970_p8, %p677_p7  ;;  %p684_p13 = por %p683_p12, %p682_p11 }
  0x1f   : > { %p680_p10 = pneg %p679_p9  ;;  %p686_p2 = por %p685_p1, %p684_p13 }
  0x21   : > { %p687_p4 = pnand %p686_p2, %p680_p10 }
  0x23   : > { %690 = shalt.err (!%p687_p4)
}
  0x24   : > { %s691_s20 = scalar_lea.vmem %s962_s6, 128  ;;  %s870_s21 = smov [#allocation5]  }
  0x25   : > { %p692_p5 = scmp.ne.s32.totalorder %s962_s6, %s691_s20  ;;  %s696_s27 = sshll.u32 %s870_s21, 4  ;;  %s697_s27 = int_to_ptr.vmem [resolvable:$false] %s696_s27 }
  0x26   : > { %s698_s28 = scalar_lea.vmem %s697_s27, 256  ;;  %p699_p3 = scmp.lt.s32.totalorder %s962_s6, %s697_s27 }
  0x27   : > { %p694_p7 = pnand %p692_p5, %p970_p8  ;;  %p700_p0 = scmp.lt.s32.totalorder %s698_s28, %s691_s20 }
  0x29   : > { %p695_p9 = pneg %p694_p7  ;;  %p701_p11 = por %p700_p0, %p699_p3 }
  0x2b   : > { %p702_p12 = pnand %p701_p11, %p695_p9 }
  0x2d   : > { %705 = shalt.err (!%p702_p12)
}
  0x2e   : > { %623 = dma.hbm_to_vmem [thread:$0]  (!%p950_p6), %s959_s30, 128, %s962_s6, %s964_s7  }
  0x2f   : > { %s995_s29 = sadd.s32 4294967295, %s868_s18   ;;  %s555_s5 = sadd.s32 4294967294, %s868_s18  }
  0x30   : > { %p44_p0 = scmp.ne.s32.totalorder %s860_s16, %s856_s15  ;;  %p1199_p3 = scmp.eq.s32.totalorder %s995_s29, 0 }
  0x31   : > { %p141_p10 = scmp.eq.s32.totalorder %s995_s29, 1  ;;  %p147_p13 = scmp.eq.s32.totalorder %s555_s5, 1 }
  0x32   : > { %p1004_p1 = por %p1199_p3, %p44_p0  ;;  %p556_p2 = scmp.ge.s32.totalorder %s868_s18, 1 }
  0x33   : > { %p1218_p4 = scmp.ne.s32.totalorder %s864_s17, %s860_s16  ;;  %p1016_p7 = por %p147_p13, %p44_p0 }
  0x34   : > { %s1217_s8 = scalar_select %p1004_p1, 1, 0 }
  0x35   : > { %p1012_p5 = por %p141_p10, %p1218_p4  ;;  %p154_p9 = scmp.lt.s32.totalorder %s868_s18, 3 }
  0x36   : > { %s1220_s6 = scalar_select %p1016_p7, 1, 0 }
  0x37   : > { %s1219_s30 = scalar_select %p1012_p5, 1, 0 }
  0x38   : > { %1221 = sst [smem:[#allocation19_spill]] %s1220_s6  ;;  %p1021_p11 = pnand %p556_p2, %p154_p9 }
  0x39   : > { %s871_s11 = smov [#allocation8]   ;;  %s1033_s20 = scalar_lea.hbm %s1189_s0, %s948_s25 }
  0x3a   : > { %s1222_s10 = scalar_select %p1021_p11, 1, 0 }
  0x3b   : > { %s166_s12 = sshll.u32 %s871_s11, 4  ;;  %p613_p12 = pneg %p1021_p11  ;;  %s1025_s12 = int_to_ptr.vmem [resolvable:$true] %s166_s12 }
  0x3c   : > { %s184_s27 = scalar_lea.vmem [#allocation2], %s945_s24  ;;  %s1048_s23 = scalar_lea.hbm %s1191_s2, %s948_s25 }
  0x3d   : > { %p1037_p0 = pnand %p613_p12, %p1199_p3  ;;  %s191_s28 = sshll.u32 %s184_s27, 4  ;;  %s1042_s28 = int_to_ptr.vmem [resolvable:$true] %s191_s28 }
  0x3e   : > { %s706_s13 = scalar_lea.hbm %s1192_s3, 256 }
  0x3f   : > { %p707_p10 = scmp.ne.s32.totalorder %s1192_s3, %s706_s13  ;;  %p708_p13 = pneg %p1037_p0 }
  0x40   : > { %p713_p9 = scmp.lt.u32.totalorder %s706_s13, %s1192_s3 }
  0x41   : > { %p709_p2 = pnand %p708_p13, %p707_p10 }
  0x43   : > { %p710_p4 = pneg %p709_p2 }
  0x45   : > { %p715_p12 = pnand %p713_p9, %p710_p4 }
  0x47   : > { %718 = shalt.err (!%p715_p12)
}
  0x48   : > { %s719_s25 = scalar_lea.vmem %s1025_s12, 256  ;;  %p727_p1 = scmp.lt.s32.totalorder %s1025_s12, %s1025_s12 }
  0x49   : > { %p720_p3 = scmp.ne.s32.totalorder %s1025_s12, %s719_s25  ;;  %p728_p11 = scmp.lt.s32.totalorder %s719_s25, %s719_s25 }
  0x4b   : > { %p722_p7 = pnand %p720_p3, %p708_p13  ;;  %p729_p6 = por %p728_p11, %p727_p1 }
  0x4d   : > { %p723_p5 = pneg %p722_p7 }
  0x4f   : > { %p730_p8 = pnand %p729_p6, %p723_p5 }
  0x51   : > { %733 = shalt.err (!%p730_p8)
}
  0x52   : > { %s872_s1 = smov 64   ;;  %s873_s18 = smov 4  }
  0x53   : > { %616 = dma.hbm_to_vmem [thread:$0]  (!%p1037_p0), %s1192_s3, 256, %s1025_s12, [#allocation9], %s872_s1, %s872_s1, %s873_s18  }
  0x54   : > { %s1224_s5 = sand.u32 1, %s864_s17   ;;  %s734_s13 = scalar_lea.hbm %s1033_s20, 128 }
  0x55   : > { %s181_s11 = scalar_lea.sflag [#allocation3], %s1224_s5  ;;  %p735_p6 = scmp.ne.s32.totalorder %s1033_s20, %s734_s13 }
  0x56   : > { %p1225_p8 = scmp.ne.s32.totalorder %s1216_s9, 0  ;;  %s739_s25 = scalar_lea.hbm %s1189_s0, 256 }
  0x57   : > { %p740_p5 = scmp.lt.u32.totalorder %s1033_s20, %s1189_s0  ;;  %p741_p7 = scmp.lt.u32.totalorder %s739_s25, %s734_s13 }
  0x58   : > { %p737_p3 = pnand %p735_p6, %p1225_p8  ;;  %p743_p10 = scmp.lt.u32.totalorder %s734_s13, %s1033_s20 }
  0x59   : > { %p742_p11 = por %p741_p7, %p740_p5 }
  0x5a   : > { %p738_p1 = pneg %p737_p3 }
  0x5b   : > { %p744_p13 = por %p743_p10, %p742_p11 }
  0x5d   : > { %p745_p0 = pnand %p744_p13, %p738_p1 }
  0x5f   : > { %748 = shalt.err (!%p745_p0)
}
  0x60   : > { %s749_s12 = scalar_lea.vmem %s1042_s28, 128  ;;  %s874_s21 = smov [#allocation2]  }
  0x61   : > { %p750_p2 = scmp.ne.s32.totalorder %s1042_s28, %s749_s12  ;;  %s754_s1 = sshll.u32 %s874_s21, 4  ;;  %s755_s1 = int_to_ptr.vmem [resolvable:$false] %s754_s1 }
  0x62   : > { %s756_s15 = scalar_lea.vmem %s755_s1, 256  ;;  %p757_p12 = scmp.lt.s32.totalorder %s1042_s28, %s755_s1 }
  0x63   : > { %p752_p4 = pnand %p750_p2, %p1225_p8  ;;  %p758_p6 = scmp.lt.s32.totalorder %s756_s15, %s749_s12 }
  0x65   : > { %p753_p9 = pneg %p752_p4  ;;  %p759_p3 = por %p758_p6, %p757_p12 }
  0x67   : > { %p760_p5 = pnand %p759_p3, %p753_p9 }
  0x69   : > { %763 = shalt.err (!%p760_p5)
}
  0x6a   : > { %p1226_p1 = scmp.ne.s32.totalorder %s1214_s26, 0  ;;  %s220_s6 = scalar_lea.vmem [#allocation7], %s945_s24 }
  0x6b   : > { %s227_s18 = sshll.u32 %s220_s6, 4  ;;  %s764_s19 = scalar_lea.hbm %s1048_s23, 128  ;;  %s228_s18 = int_to_ptr.vmem [resolvable:$true] %s227_s18 }
  0x6c   : > { %620 = dma.hbm_to_vmem [thread:$0]  (!%p1226_p1), %s1033_s20, 128, %s1042_s28, %s181_s11  }
  0x6d   : > { %p765_p7 = scmp.ne.s32.totalorder %s1048_s23, %s764_s19  ;;  %s769_s13 = scalar_lea.hbm %s1191_s2, 256 }
  0x6e   : > { %p770_p13 = scmp.lt.u32.totalorder %s1048_s23, %s1191_s2  ;;  %p771_p0 = scmp.lt.u32.totalorder %s769_s13, %s764_s19 }
  0x6f   : > { %p767_p11 = pnand %p765_p7, %p1225_p8  ;;  %p773_p4 = scmp.lt.u32.totalorder %s764_s19, %s1048_s23 }
  0x70   : > { %p772_p2 = por %p771_p0, %p770_p13 }
  0x71   : > { %p768_p10 = pneg %p767_p11 }
  0x72   : > { %p774_p9 = por %p773_p4, %p772_p2 }
  0x74   : > { %p775_p12 = pnand %p774_p9, %p768_p10 }
  0x76   : > { %778 = shalt.err (!%p775_p12)
}
  0x77   : > { %s779_s24 = scalar_lea.vmem %s228_s18, 128  ;;  %s875_s20 = smov [#allocation7]  }
  0x78   : > { %p780_p6 = scmp.ne.s32.totalorder %s228_s18, %s779_s24  ;;  %s784_s28 = sshll.u32 %s875_s20, 4  ;;  %s785_s28 = int_to_ptr.vmem [resolvable:$false] %s784_s28 }
  0x79   : > { %s786_s11 = scalar_lea.vmem %s785_s28, 256  ;;  %p787_p7 = scmp.lt.s32.totalorder %s228_s18, %s785_s28 }
  0x7a   : > { %p782_p3 = pnand %p780_p6, %p1225_p8  ;;  %p788_p11 = scmp.lt.s32.totalorder %s786_s11, %s779_s24 }
  0x7c   : > { %p783_p5 = pneg %p782_p3  ;;  %p789_p1 = por %p788_p11, %p787_p7 }
  0x7e   : > { %p790_p0 = pnand %p789_p1, %p783_p5 }
  0x80   : > { %793 = shalt.err (!%p790_p0)
}
  0x81   : > { %p1227_p13 = scmp.ne.s32.totalorder %s1214_s26, 0  ;;  %p1228_p10 = scmp.ne.s32.totalorder %s1222_s10, 0 }
  0x82   : > { %s1116_s9 = sand.u32 (!%p1228_p10), 1, %s860_s16   ;;  %p1229_p8 = scmp.ne.s32.totalorder (!%p1228_p10), %s1217_s8, 0 }
  0x83   : > { %626 = dma.hbm_to_vmem [thread:$0]  (!%p1227_p13), %s1048_s23, 128, %s228_s18, %s964_s7  }
  0x84   : > { %236 = sbr.rel (%p1228_p10) target bundleno = 516 (0x204), region = 36  ;;  %s1119_s25 = sshll.u32 (!%p1228_p10), %s1116_s9, 3 }
  0x85   : > { %s239_s12 = scalar_lea.sflag (!%p1228_p10), [#allocation3], %s1116_s9  ;;  %s242_s21 = scalar_lea.vmem (!%p1228_p10), [#allocation2], %s1119_s25 }
  0x8b   : > { %839 = dma.done.wait (%p1229_p8), %s239_s12, 128  }
  0x8c   : > { %841 = vsyncadd (%p1229_p8), %s239_s12, 4294967168  ;;  %s247_s23 = sand.u32 1, %s995_s29   ;;  %s251_s7 = scalar_lea.vmem [#allocation5], %s1119_s25 }
  0x8d   : > { %s248_s26 = scalar_lea.sflag [#allocation6], %s247_s23 }
  0x8e   : > { %843 = dma.done.wait (%p1229_p8), %s248_s26, 256  }
  0x8f   : > { %845 = vsyncadd (%p1229_p8), %s248_s26, 4294967040  ;;  %s260_s10 = scalar_lea.vmem [#allocation7], %s1119_s25  ;;  %p1230_p1 = scmp.eq.s32.totalorder %s995_s29, 0 }
  0x91   : > { %847 = dma.done.wait (%p1230_p1), [#allocation9], 256   ;;  %p1231_p2 = pmov %p1230_p1 }
  0x92   : > { %v876_v0 = vmov 0   ;;  %v877_v1 = vmov 0.0   ;;  %v301_v2 = vld [vmem:[%s260_s10] sm:$0xff]  ;;  %v674_v3 = vld [vmem:[#allocation8] sm:$0xff]   ;;  %v675_v4 = vld [vmem:[#allocation8 + $0x8] sm:$0xff]   ;;  %vm878_vm0 = vmmov 0  }
  0x93   : > { %849 = vsyncadd (%p1231_p2), [#allocation9], 4294967040  ;;  %673 = vset.pattern.permute.xlu0 %v876_v0  ;;  %593 = vmatprep.subr.bf16.mxu1 %v877_v1  ;;  %v300_v5 = vld [vmem:[%s251_s7] sm:$0xff]  ;;  %vm328_vm1 = vcmask 261120   ;;  %v415_v17 = vld [vmem:[%s242_s21] sm:$0xff]  ;;  %s576_s8 = sshll.u32 %s995_s29, 7 }
  0x94   : > { %585 = vmatprep.subr.bf16.mxu0 %v877_v1  ;;  %304 = vperm.xlu0 %673, %v301_v2   ;;  %s298_s1 = scalar_lea.vmem [#allocation10], %s1119_s25  ;;  %s1145_s19 = scalar_lea.hbm %s1193_s4, %s576_s8 }
  0x95   : > { %594 = vmatpush3.bf16.msra.mxu1 %v674_v3  ;;  %586 = vmatpush3.bf16.msra.mxu0 %v674_v3  ;;  %s432_s15 = sshll.u32 %s298_s1, 4  ;;  %s419_s22 = scalar_lea.sflag [#allocation4], %s1116_s9  ;;  %s1147_s15 = int_to_ptr.vmem [resolvable:$true] %s432_s15 }
  0x96   : > { %595 = vmatprep.subr.bf16.mxu1 %v877_v1  ;;  %597 = vmatprep.mubr.msk.bf16.mxu1 %vm878_vm0, %v877_v1  ;;  %s794_s29 = scalar_lea.vmem %s1147_s15, 128  ;;  %p1232_p9 = scmp.ne.s32.totalorder %s1219_s30, 0 }
  0x97   : > { %587 = vmatprep.subr.bf16.mxu0 %v877_v1  ;;  %589 = vmatprep.mubr.msk.bf16.mxu0 %vm878_vm0, %v877_v1  ;;  %p795_p4 = scmp.ne.s32.totalorder %s1147_s15, %s794_s29  ;;  %s879_s5 = smov [#allocation10]  }
  0x98   : > { %s798_s13 = sshll.u32 %s879_s5, 4  ;;  %s799_s13 = int_to_ptr.vmem [resolvable:$false] %s798_s13 }
  0x99   : > { %596 = vmatpush3.bf16.msra.mxu1 %v675_v4  ;;  %588 = vmatpush3.bf16.msra.mxu0 %v675_v4  ;;  %p796_p12 = pnand %p795_p4, %p1232_p9  ;;  %s800_s14 = scalar_lea.vmem %s799_s13, 256 }
  0x9a   : > { %p801_p3 = scmp.lt.s32.totalorder %s1147_s15, %s799_s13  ;;  %p802_p5 = scmp.lt.s32.totalorder %s800_s14, %s794_s29 }
  0x9b   : > { %p797_p6 = pneg %p796_p12 }
  0x9c   : > { %p803_p7 = por %p802_p5, %p801_p3 }
  0x9e   : > { %p804_p11 = pnand %p803_p7, %p797_p6 }
 0x113   : > { %v305_v6 = vpop.permute.xlu0 %304 }
 0x114   : > { %v307_v7 = vmul.f32 %v305_v6, %v300_v5 }
 0x116   : > { %v308_v8 = vpack.c.bf16 %v307_v7, %v307_v7 }
 0x118   : > { %v309_v9 = vunpack.c.l.bf16 %v308_v8  ;;  %598 = vmatmul.mubr.msk.bf16.vlgmr.msra.gmra.mrb[0].mxu1 %vm328_vm1, %v308_v8 }
 0x11a   : > { %v310_v10 = vsub.f32 %v307_v7, %v309_v9 }
 0x11c   : > { %v311_v11 = vpack.c.bf16 %v310_v10, %v310_v10 }
 0x11e   : > { %590 = vmatmul.mubr.msk.bf16.vlgmr.msra.gmra.mrb[0].mxu0 %vm328_vm1, %v311_v11 }
 0x1eb   : > { %v409_v12 = vpop.f32.mrb[0].mxu1 }
 0x1ec   : > { %v599_v13 = vpop.f32.mrb[1].mxu1 }
 0x1ed   : > { %v412_v14 = vpop.f32.mrb[2].mxu1 }
 0x1ee   : > { %v600_v15 = vpop.f32.mrb[3].mxu1 }
 0x1f1   : > { %v366_v16 = vpop.f32.mrb[0].mxu0 }
 0x1f2   : > { %v410_v18 = vadd.f32 %v409_v12, %v366_v16  ;;  %v591_v19 = vpop.f32.mrb[1].mxu0 }
 0x1f3   : > { %v369_v20 = vpop.f32.mrb[2].mxu0 }
 0x1f4   : > { %v416_v21 = vadd.f32 %v415_v17, %v410_v18  ;;  %v592_v22 = vpop.f32.mrb[3].mxu0 }
 0x1f6   : > { %417 = vst [vmem:[%s298_s1] sm:$0xff] %v416_v21 }
 0x1f7   : > { %807 = shalt.err (!%p804_p11)
}
 0x1f8   : > { %s808_s27 = scalar_lea.hbm %s1145_s19, 128  ;;  %s812_s28 = scalar_lea.hbm %s1193_s4, 256 }
 0x1f9   : > { %p809_p0 = scmp.ne.s32.totalorder %s1145_s19, %s808_s27  ;;  %p813_p8 = scmp.lt.u32.totalorder %s1145_s19, %s1193_s4 }
 0x1fa   : > { %p814_p1 = scmp.lt.u32.totalorder %s812_s28, %s808_s27  ;;  %p816_p4 = scmp.lt.u32.totalorder %s808_s27, %s1145_s19 }
 0x1fb   : > { %p810_p13 = pnand %p809_p0, %p1232_p9 }
 0x1fc   : > { %p815_p2 = por %p814_p1, %p813_p8 }
 0x1fd   : > { %p811_p10 = pneg %p810_p13 }
 0x1fe   : > { %p817_p12 = por %p816_p4, %p815_p2 }
 0x200   : > { %p818_p6 = pnand %p817_p12, %p811_p10 }
 0x202   : > { %821 = shalt.err (!%p818_p6)
}
 0x203   : > { %611 = dma.vmem_to_hbm [thread:$0]  (%p1232_p9), %s1147_s15, 128, %s1145_s19, %s419_s22  }
 0x204 PF: > { %s1233_s25 = sld [smem:[#allocation15_spill]]  ;;  %s1234_s12 = sld [smem:[#allocation19_spill]] }
 0x205   : > { %s1235_s21 = sld [smem:[#allocation16_spill]] }
 0x20a   : > { %s444_s23 = sand.u32 1, %s1233_s25   ;;  %p1236_p3 = scmp.ne.s32.totalorder %s1234_s12, 0 }
 0x20b   : > { %p1237_p5 = scmp.ge.s32.totalorder %s1235_s21, 2  ;;  %s445_s26 = scalar_lea.sflag [#allocation4], %s444_s23 }
 0x20d   : > { %p628_p7 = pnand %p1237_p5, %p1236_p3 }
 0x20f   : > { %851 = dma.done.wait (!%p628_p7), %s445_s26, 128  }
 0x210   : > { %853 = vsyncadd (!%p628_p7), %s445_s26, 4294967168  ;;  %s1238_s18 = sld [smem:[#allocation17_spill]]  ;;  %s1239_s7 = sld [smem:[#allocation18_spill]] }
 0x211   : > { %s1240_s15 = smov %s860_s16  ;;  %s1241_s16 = smov %s864_s17 }
 0x216   : > { %p21_p11 = scmp.ge.s32.totalorder %s1238_s18, 4   ;;  %s1242_s17 = smov %s1239_s7 }
 0x218   :  { %23 = sbr.rel (!%p21_p11) target bundleno = 10 (0xa), region = 109 }
 0x21f   :  { %450 = vsyncpa [#allocation3], 1 }
 0x220   :  { %452 = vsyncpa [#allocation3 + $0x1], 1 }
 0x221   :  { %453 = vsyncpa [#allocation6], 1 }
 0x222   :  { %455 = vsyncpa [#allocation6 + $0x1], 1 }
 0x223   :  { %456 = vsyncpa [#allocation9], 1 }
 0x224   :  { %457 = vsyncpa [#allocation4], 1 }
 0x225   :  { %459 = vsyncpa [#allocation4 + $0x1], 1 }

</bundles_post_ra>
